<compile_context>
chip_gen: v7x
topology: tpu7x:2x2x1
jax: 0.10.0
libtpu: 0.0.40
codegen_flags: <defaults>
</compile_context>

<pallas_src>
import functools

import jax
import jax.numpy as jnp
from jax.experimental import pallas as pl
from jax.experimental.pallas import tpu as pltpu


def coupling_kernel(x_ref, w1_ref, b1_ref, w2_ref, b2_ref, w3_ref, b3_ref,
                    o_ref, *, act_dtype):
    # Transposed formulation: batch tile (TB) on the lane axis for every tensor.
    xt = x_ref[...].astype(jnp.float32)                      # (D, TB) f32
    xb = xt.astype(jnp.bfloat16)

    # Fused scale+translate MLP.  Masks are already folded into w1 / w3 / b3,
    # so there are no mask multiplies in the kernel.
    z1 = jnp.dot(w1_ref[...], xb,
                 preferred_element_type=jnp.float32) + b1_ref[...]
    h1 = jnp.tanh(z1.astype(act_dtype))                      # (2H, TB)
    z2 = jnp.dot(w2_ref[...], h1.astype(jnp.bfloat16),
                 preferred_element_type=jnp.float32) + b2_ref[...]
    h2 = jnp.tanh(z2.astype(act_dtype))                      # (2H, TB)
    y = jnp.dot(w3_ref[...], h2.astype(jnp.bfloat16),
                preferred_element_type=jnp.float32) + b3_ref[...]   # (2D, TB)

    D = o_ref.shape[0]
    log_s = y[:D, :]
    t = y[D:, :]
    o_ref[...] = (xt * jnp.exp(log_s) + t).astype(o_ref.dtype)


def _fuse_params(mask, p, weight_dtype=jnp.bfloat16):
    """Fuse the two FCNNs into one block-diagonal net (transposed layout) and
    fold the input mask into W1 and the output (1-mask) into W3/b3."""
    D = mask.shape[0]
    H = p["ws1"].shape[1]
    inv = 1.0 - mask

    # Layer 1 (transposed): (2H, D); fold the *input* mask into the columns.
    w1 = jnp.concatenate([p["ws1"], p["wt1"]], axis=1).T * mask[None, :]   # (2H, D)
    b1 = jnp.concatenate([p["bs1"], p["bt1"]]).reshape(2 * H, 1)

    # Layer 2 (transposed block-diagonal): (2H, 2H).
    w2 = jnp.zeros((2 * H, 2 * H), jnp.float32)
    w2 = w2.at[:H, :H].set(p["ws2"].T).at[H:, H:].set(p["wt2"].T)
    b2 = jnp.concatenate([p["bs2"], p["bt2"]]).reshape(2 * H, 1)

    # Layer 3 (transposed block-diagonal): (2D, 2H); fold (1-mask) into rows/bias.
    w3 = jnp.zeros((2 * D, 2 * H), jnp.float32)
    w3 = w3.at[:D, :H].set(p["ws3"].T).at[D:, H:].set(p["wt3"].T)
    out_mask = jnp.concatenate([inv, inv]).reshape(2 * D, 1)
    w3 = w3 * out_mask
    b3 = jnp.concatenate([p["bs3"], p["bt3"]]).reshape(2 * D, 1) * out_mask

    return (w1.astype(weight_dtype), b1.astype(jnp.float32),
            w2.astype(weight_dtype), b2.astype(jnp.float32),
            w3.astype(weight_dtype), b3.astype(jnp.float32))


def _bf16_activations_supported():
    """bf16 tanh only on chips whose VPU/EUP have a bf16 path (v6e / v7x)."""
    try:
        kind = jax.devices()[0].device_kind.lower()
    except Exception:
        return True
    return not any(tag in kind for tag in ("v2", "v3", "v4", "v5"))


def _pick_tile_b(B):
    """Lane-aligned batch tile: multiple of 128 (or the full batch when
    B <= 128), large enough to amortise per-grid-step overhead, and capped so
    the 1-D 'parallel' grid has >= 2 steps whenever B allows (v7x megacore)."""
    if B <= 128:
        return B
    tile = (min(B, 2048) // 128) * 128
    if pl.cdiv(B, tile) < 2:
        half = ((pl.cdiv(B, 2) + 127) // 128) * 128
        tile = max(128, min(tile, half))
    return tile


def coupling_layer(x, mask, params, *, tile_b=None, weight_dtype=jnp.bfloat16):
    """x: (B, D) f32, mask: (D,) f32, params: dict of the two FCNNs' weights."""
    B, D = x.shape
    if tile_b is None:
        tile_b = _pick_tile_b(B)

    w1, b1, w2, b2, w3, b3 = _fuse_params(mask, params, weight_dtype)
    act_dtype = jnp.bfloat16 if _bf16_activations_supported() else jnp.float32

    # Present batch on the lane axis inside the kernel.  The wrapper transposes
    # are tiny XLA ops on a (B, D<=16) array.
    # TODO(synk): in a multi-layer flow keep activations in (D, B) layout across
    # layers so these per-layer wrapper transposes disappear entirely.
    x_t = x.T                                                # (D, B)

    def resident(arr):
        # Whole (small) parameter resident in VMEM; constant index_map, so it
        # is only DMA'd once per call.
        # TODO(synk): for large D/H add pipeline_mode=pl.Buffered(1) and set
        # vmem_limit_bytes explicitly (trivial at D=16/H=32).
        return pl.BlockSpec(arr.shape, lambda i: (0, 0))

    kernel = functools.partial(coupling_kernel, act_dtype=act_dtype)

    out_t = pl.pallas_call(
        kernel,
        out_shape=jax.ShapeDtypeStruct((D, B), x.dtype),
        grid_spec=pltpu.PrefetchScalarGridSpec(
            num_scalar_prefetch=0,
            grid=(pl.cdiv(B, tile_b),),
            in_specs=[
                pl.BlockSpec((D, tile_b), lambda i: (0, i)),   # x^T tiled over batch
                resident(w1), resident(b1),
                resident(w2), resident(b2),
                resident(w3), resident(b3),
            ],
            out_specs=pl.BlockSpec((D, tile_b), lambda i: (0, i)),
        ),
        compiler_params=pltpu.CompilerParams(
            dimension_semantics=("parallel",)),
    )(x_t, w1, b1, w2, b2, w3, b3)

    return out_t.T


def init_params(key, num_inputs, num_hidden):
    """Mirror the PyTorch module init: PyTorch-Linear uniform for the hidden
    layers, zero-initialised final layers of both nets."""
    def linear_init(k, fan_in, fan_out):
        kw, kb = jax.random.split(k)
        bound = 1.0 / jnp.sqrt(float(fan_in))
        w = jax.random.uniform(kw, (fan_in, fan_out), jnp.float32, -bound, bound)
        b = jax.random.uniform(kb, (fan_out,), jnp.float32, -bound, bound)
        return w, b

    ks = jax.random.split(key, 4)
    ws1, bs1 = linear_init(ks[0], num_inputs, num_hidden)
    ws2, bs2 = linear_init(ks[1], num_hidden, num_hidden)
    ws3 = jnp.zeros((num_hidden, num_inputs), jnp.float32)
    bs3 = jnp.zeros((num_inputs,), jnp.float32)

    wt1, bt1 = linear_init(ks[2], num_inputs, num_hidden)
    wt2, bt2 = linear_init(ks[3], num_hidden, num_hidden)
    wt3 = jnp.zeros((num_hidden, num_inputs), jnp.float32)
    bt3 = jnp.zeros((num_inputs,), jnp.float32)

    return dict(ws1=ws1, bs1=bs1, ws2=ws2, bs2=bs2, ws3=ws3, bs3=bs3,
                wt1=wt1, bt1=bt1, wt2=wt2, bt2=bt2, wt3=wt3, bt3=bt3)


def coupling_layer_ref(x, mask, p):
    """Pure-JAX f32 reference mirroring the original (unfused) module math."""
    m = mask.reshape(1, -1)
    masked = x * m

    def fcnn(w1, b1, w2, b2, w3, b3):
        h = jnp.tanh(masked @ w1 + b1)
        h = jnp.tanh(h @ w2 + b2)
        return h @ w3 + b3

    log_s = fcnn(p["ws1"], p["bs1"], p["ws2"], p["bs2"], p["ws3"], p["bs3"]) * (1 - m)
    t = fcnn(p["wt1"], p["bt1"], p["wt2"], p["bt2"], p["wt3"], p["bt3"]) * (1 - m)
    return x * jnp.exp(log_s) + t


if __name__ == "__main__":
    B, D, H = 256, 16, 32   # batch, num_inputs, num_hidden (small demo shapes)
    # Default tile picker gives tile_b=128 -> 2-step "parallel" grid (both v7x TCs).

    key = jax.random.PRNGKey(0)
    k_x, k_p, k_w3s, k_w3t, k_b3s, k_b3t = jax.random.split(key, 6)

    x = jax.random.normal(k_x, (B, D), jnp.float32)
    mask = (jnp.arange(D) % 2).astype(jnp.float32)   # alternating binary mask
    params = init_params(k_p, D, H)

    # --- Check 1: the module's true init (zero final layers) => out == x ---
    out = jax.block_until_ready(coupling_layer(x, mask, params))
    ref = coupling_layer_ref(x, mask, params)
    assert out.shape == (B, D)
    assert jnp.allclose(out, ref, atol=1e-6, rtol=1e-6), "mismatch (zero-init case)"

    # --- Check 2: non-zero final layers to exercise tanh/exp + mask folding ---
    p2 = dict(params)
    p2["ws3"] = 0.1 * jax.random.normal(k_w3s, (H, D), jnp.float32) / jnp.sqrt(float(H))
    p2["wt3"] = 0.1 * jax.random.normal(k_w3t, (H, D), jnp.float32) / jnp.sqrt(float(H))
    p2["bs3"] = 0.05 * jax.random.normal(k_b3s, (D,), jnp.float32)
    p2["bt3"] = 0.05 * jax.random.normal(k_b3t, (D,), jnp.float32)

    out2 = jax.block_until_ready(coupling_layer(x, mask, p2))
    ref2 = coupling_layer_ref(x, mask, p2)
    # bf16 weights (and bf16 tanh on v6e/v7x) vs f32 reference -> loose tolerance.
    assert jnp.allclose(out2, ref2, atol=3e-2, rtol=3e-2), "mismatch (random final layers)"

    print("KERNEL_OK")
</pallas_src>

<mosaic_0001>
module attributes {stable_mosaic.version = 11 : i64} {
  func.func @coupling_kernel(%arg0: i32, %arg1: memref<16x128xf32, #tpu.memory_space<vmem>>, %arg2: memref<64x16xbf16, #tpu.memory_space<vmem>>, %arg3: memref<64x1xf32, #tpu.memory_space<vmem>>, %arg4: memref<64x64xbf16, #tpu.memory_space<vmem>>, %arg5: memref<64x1xf32, #tpu.memory_space<vmem>>, %arg6: memref<32x64xbf16, #tpu.memory_space<vmem>>, %arg7: memref<32x1xf32, #tpu.memory_space<vmem>>, %arg8: memref<16x128xf32, #tpu.memory_space<vmem>>) attributes {dimension_semantics = [#tpu.dimension_semantics<parallel>], iteration_bounds = array<i64: 2>, scalar_prefetch = 0 : i64, scratch_operands = 0 : i64, tpu.core_type = #tpu.core_type<tc>, window_params = [{transform_indices = @transform_0, window_bounds = array<i64: 16, 128>}, {pipeline_mode = #tpu.pipeline_mode<synchronous>, transform_indices = @transform_1, window_bounds = array<i64: 64, 16>}, {pipeline_mode = #tpu.pipeline_mode<synchronous>, transform_indices = @transform_2, window_bounds = array<i64: 64, 1>}, {pipeline_mode = #tpu.pipeline_mode<synchronous>, transform_indices = @transform_3, window_bounds = array<i64: 64, 64>}, {pipeline_mode = #tpu.pipeline_mode<synchronous>, transform_indices = @transform_4, window_bounds = array<i64: 64, 1>}, {pipeline_mode = #tpu.pipeline_mode<synchronous>, transform_indices = @transform_5, window_bounds = array<i64: 32, 64>}, {pipeline_mode = #tpu.pipeline_mode<synchronous>, transform_indices = @transform_6, window_bounds = array<i64: 32, 1>}, {transform_indices = @transform_7, window_bounds = array<i64: 16, 128>}]} {
    %c0 = arith.constant 0 : index
    %c0_0 = arith.constant 0 : index
    %0 = vector.load %arg1[%c0, %c0_0] : memref<16x128xf32, #tpu.memory_space<vmem>>, vector<16x128xf32>
    %1 = arith.truncf %0 : vector<16x128xf32> to vector<16x128xbf16>
    %c0_1 = arith.constant 0 : index
    %c0_2 = arith.constant 0 : index
    %2 = vector.load %arg2[%c0_1, %c0_2] : memref<64x16xbf16, #tpu.memory_space<vmem>>, vector<64x16xbf16>
    %cst = arith.constant dense<0.000000e+00> : vector<64x128xf32>
    %3 = tpu.matmul %2, %1, %cst {dimension_numbers = #tpu.dot_dimension_numbers<[1], [0], [0], [1], [0, 0, 1, 1], [], []>} : vector<64x16xbf16>, vector<16x128xbf16>, vector<64x128xf32> -> vector<64x128xf32>
    %c0_3 = arith.constant 0 : index
    %c0_4 = arith.constant 0 : index
    %4 = vector.load %arg3[%c0_3, %c0_4] : memref<64x1xf32, #tpu.memory_space<vmem>>, vector<64x1xf32>
    %5 = vector.broadcast %4 : vector<64x1xf32> to vector<64x128xf32>
    %6 = arith.addf %3, %5 : vector<64x128xf32>
    %7 = arith.truncf %6 : vector<64x128xf32> to vector<64x128xbf16>
    %8 = math.tanh %7 : vector<64x128xbf16>
    %c0_5 = arith.constant 0 : index
    %c0_6 = arith.constant 0 : index
    %9 = vector.load %arg4[%c0_5, %c0_6] : memref<64x64xbf16, #tpu.memory_space<vmem>>, vector<64x64xbf16>
    %cst_7 = arith.constant dense<0.000000e+00> : vector<64x128xf32>
    %10 = tpu.matmul %9, %8, %cst_7 {dimension_numbers = #tpu.dot_dimension_numbers<[1], [0], [0], [1], [0, 0, 1, 1], [], []>} : vector<64x64xbf16>, vector<64x128xbf16>, vector<64x128xf32> -> vector<64x128xf32>
    %c0_8 = arith.constant 0 : index
    %c0_9 = arith.constant 0 : index
    %11 = vector.load %arg5[%c0_8, %c0_9] : memref<64x1xf32, #tpu.memory_space<vmem>>, vector<64x1xf32>
    %12 = vector.broadcast %11 : vector<64x1xf32> to vector<64x128xf32>
    %13 = arith.addf %10, %12 : vector<64x128xf32>
    %14 = arith.truncf %13 : vector<64x128xf32> to vector<64x128xbf16>
    %15 = math.tanh %14 : vector<64x128xbf16>
    %c0_10 = arith.constant 0 : index
    %c0_11 = arith.constant 0 : index
    %16 = vector.load %arg6[%c0_10, %c0_11] : memref<32x64xbf16, #tpu.memory_space<vmem>>, vector<32x64xbf16>
    %cst_12 = arith.constant dense<0.000000e+00> : vector<32x128xf32>
    %17 = tpu.matmul %16, %15, %cst_12 {dimension_numbers = #tpu.dot_dimension_numbers<[1], [0], [0], [1], [0, 0, 1, 1], [], []>} : vector<32x64xbf16>, vector<64x128xbf16>, vector<32x128xf32> -> vector<32x128xf32>
    %c0_13 = arith.constant 0 : index
    %c0_14 = arith.constant 0 : index
    %18 = vector.load %arg7[%c0_13, %c0_14] : memref<32x1xf32, #tpu.memory_space<vmem>>, vector<32x1xf32>
    %19 = vector.broadcast %18 : vector<32x1xf32> to vector<32x128xf32>
    %20 = arith.addf %17, %19 : vector<32x128xf32>
    %21 = vector.extract_strided_slice %20 {offsets = [0, 0], sizes = [16, 128], strides = [1, 1]} : vector<32x128xf32> to vector<16x128xf32>
    %22 = vector.extract_strided_slice %20 {offsets = [16, 0], sizes = [16, 128], strides = [1, 1]} : vector<32x128xf32> to vector<16x128xf32>
    %23 = math.exp %21 : vector<16x128xf32>
    %24 = arith.mulf %0, %23 : vector<16x128xf32>
    %25 = arith.addf %24, %22 : vector<16x128xf32>
    %c0_15 = arith.constant 0 : index
    %c0_16 = arith.constant 0 : index
    %26 = vector.load %arg8[%c0_15, %c0_16] : memref<16x128xf32, #tpu.memory_space<vmem>>, vector<16x128xf32>
    tpu.vector_store %arg8[%c0_15, %c0_16], %25 {strides = array<i32>} : memref<16x128xf32, #tpu.memory_space<vmem>>, vector<16x128xf32>,
    return
  }
  func.func @transform_0(%arg0: i32) -> (i32, i32) {
    %c0_i32 = arith.constant 0 : i32
    %c0_i32_0 = arith.constant 0 : i32
    return %c0_i32, %arg0 : i32, i32
  }
  func.func @transform_1(%arg0: i32) -> (i32, i32) {
    %c0_i32 = arith.constant 0 : i32
    %c0_i32_0 = arith.constant 0 : i32
    %c0_i32_1 = arith.constant 0 : i32
    return %c0_i32, %c0_i32_0 : i32, i32
  }
  func.func @transform_2(%arg0: i32) -> (i32, i32) {
    %c0_i32 = arith.constant 0 : i32
    %c0_i32_0 = arith.constant 0 : i32
    %c0_i32_1 = arith.constant 0 : i32
    return %c0_i32, %c0_i32_0 : i32, i32
  }
  func.func @transform_3(%arg0: i32) -> (i32, i32) {
    %c0_i32 = arith.constant 0 : i32
    %c0_i32_0 = arith.constant 0 : i32
    %c0_i32_1 = arith.constant 0 : i32
    return %c0_i32, %c0_i32_0 : i32, i32
  }
  func.func @transform_4(%arg0: i32) -> (i32, i32) {
    %c0_i32 = arith.constant 0 : i32
    %c0_i32_0 = arith.constant 0 : i32
    %c0_i32_1 = arith.constant 0 : i32
    return %c0_i32, %c0_i32_0 : i32, i32
  }
  func.func @transform_5(%arg0: i32) -> (i32, i32) {
    %c0_i32 = arith.constant 0 : i32
    %c0_i32_0 = arith.constant 0 : i32
    %c0_i32_1 = arith.constant 0 : i32
    return %c0_i32, %c0_i32_0 : i32, i32
  }
  func.func @transform_6(%arg0: i32) -> (i32, i32) {
    %c0_i32 = arith.constant 0 : i32
    %c0_i32_0 = arith.constant 0 : i32
    %c0_i32_1 = arith.constant 0 : i32
    return %c0_i32, %c0_i32_0 : i32, i32
  }
  func.func @transform_7(%arg0: i32) -> (i32, i32) {
    %c0_i32 = arith.constant 0 : i32
    %c0_i32_0 = arith.constant 0 : i32
    return %c0_i32, %arg0 : i32, i32
  }
}

</mosaic_0001>

<bundles_post_ra>
// kernel: tpu_custom_call.1
= control target key start
LH: loop header
LB: loop body
LE: loop exit
PB: predicated region body
PF: predicated region fallthrough
CT: control target
= control target key end

     0   :  { %12 = vsyncpa [#allocation4], 0  ;;  %s1324_s0 = inlined_call_operand.vmem [shape: f32[16,256], index: 0, kind: input, shape index: {}]   ;;  %s1325_s1 = inlined_call_operand.vmem [shape: bf16[64,16], index: 1, kind: input, shape index: {}]   ;;  %s1326_s2 = inlined_call_operand.vmem [shape: f32[64,1], index: 2, kind: input, shape index: {}]   ;;  %s1327_s3 = inlined_call_operand.vmem [shape: bf16[64,64], index: 3, kind: input, shape index: {}]   ;;  %s1328_s4 = inlined_call_operand.vmem [shape: f32[64,1], index: 4, kind: input, shape index: {}]   ;;  %s1329_s5 = inlined_call_operand.vmem [shape: bf16[32,64], index: 5, kind: input, shape index: {}]   ;;  %s1330_s6 = inlined_call_operand.vmem [shape: f32[32,1], index: 6, kind: input, shape index: {}]   ;;  %s1331_s7 = inlined_call_operand.hbm [shape: f32[16,256], index: 7, kind: output, shape index: {}]  }
   0x1   :  { %14 = vsyncpa [#allocation4 + $0x1], 0  ;;  %s1100_s24 = smov 0   ;;  %s1102_s25 = smov 0  }
   0x2   :  { %s1104_s26 = smov 0   ;;  %s1106_s27 = smov 0  }
   0x3 LB: > { %s826_s28 = sadd.s32 4294967295, %s1053_s27   ;;  %s827_s29 = sadd.s32 4294967294, %s1053_s27   ;;  %s1053_s27 = sphi %s1106_s27, %s1337_s27   ;;  %s1049_s26 = sphi %s1104_s26, %s1336_s26   ;;  %s1045_s25 = sphi %s1102_s25, %s1335_s25   ;;  %s1041_s24 = sphi %s1100_s24, %s1334_s24  }
   0x4   : > { %s1123_s30 = sadd.s32 1, %s1053_s27   ;;  %s27_s8 = sadd.s32 1, %s1049_s26 }
   0x5   : > { %s24_s9 = ssub.s32 %s1053_s27, %s1123_s30  ;;  %p34_p0 = scmp.ne.s32.totalorder %s1049_s26, %s1045_s25 }
   0x6   : > { %p25_p1 = scmp.eq.s32.totalorder %s24_s9, 0  ;;  %p35_p2 = scmp.eq.s32.totalorder %s1053_s27, 0 }
   0x7   : > { %p190_p3 = scmp.eq.s32.totalorder %s826_s28, 1  ;;  %p195_p4 = scmp.ne.s32.totalorder %s1045_s25, %s1041_s24 }
   0x8   : > { %s1136_s10 = scalar_select %p25_p1, %s1049_s26, %s27_s8  }
   0x9   : > { %p36_p5 = por %p35_p2, %p34_p0  ;;  %p1138_p6 = por %p190_p3, %p34_p0 }
   0xa   : > { %p196_p7 = scmp.eq.s32.totalorder %s827_s29, 1  ;;  %p829_p9 = scmp.ge.s32.totalorder %s1053_s27, 2 }
   0xc   : > { %p1142_p8 = por %p196_p7, %p195_p4  ;;  %230 = sbr.rel (%p829_p9) target bundleno = 26 (0x1a), region = 40 }
  0x13   : > { %233 = sbr.rel (!%p36_p5) target bundleno = 26 (0x1a), region = 44  ;;  %s235_s13 = sand.u32 (%p36_p5), 1, %s1049_s26  }
  0x14   : > { %s831_s14 = sshll.u32 (%p36_p5), %s1053_s27, 3  ;;  %s830_s15 = sshll.u32 (%p36_p5), %s235_s13, 4 }
  0x15   : > { %s239_s18 = scalar_lea.vmem (%p36_p5), %s1324_s0, %s831_s14  ;;  %s237_s19 = scalar_lea.vmem (%p36_p5), [#allocation2], %s830_s15 }
  0x16   : > { %v269_v0 = vld [vmem:[%s239_s18] sm:$0xff] (%p36_p5)  ;;  %v271_v1 = vld [vmem:[%s239_s18 + $0x10] sm:$0xff] (%p36_p5) }
  0x17   : > { %270 = vst [vmem:[%s237_s19] sm:$0xff] (%p36_p5), %v269_v0  ;;  %272 = vst [vmem:[%s237_s19 + $0x8] sm:$0xff] (%p36_p5), %v271_v1 }
  0x1a PF: > { %p832_p10 = scmp.ge.s32.totalorder %s1053_s27, 1  ;;  %p277_p11 = scmp.lt.s32.totalorder %s1053_s27, 3 }
  0x1c   : > { %p278_p12 = pnand %p832_p10, %p277_p11 }
  0x1d   : > { %s284_s20 = sand.u32 (!%p278_p12), 1, %s1045_s25   ;;  %v961_v2 = vld [vmem:[%s1325_s1] sm:$0xff] (!%p278_p12)   ;;  %vm395_vm0 = vcmask (!%p278_p12), 130048   ;;  %v1055_v6 = vmov (!%p278_p12), 0   ;;  %v329_v8 = vld [vmem:[%s1326_s2 + $0x10] sm:$0xff] (!%p278_p12)  ;;  %v962_v9 = vld [vmem:[%s1325_s1 + $0x8] sm:$0xff] (!%p278_p12)  }
  0x1e   : > { %281 = sbr.rel (%p278_p12) target bundleno = 783 (0x30f), region = 82  ;;  %s1162_s23 = sshll.u32 (!%p278_p12), %s284_s20, 4  ;;  %880 = vmatprep.mubr.msk.bf16.mxu0 (!%p278_p12), %vm395_vm0, %v961_v2  ;;  %959 = vset.pattern.permute.xlu0 (!%p278_p12), %v1055_v6  ;;  %v327_v7 = vld [vmem:[%s1326_s2] sm:$0xff] (!%p278_p12)  ;;  %v963_v10 = vld [vmem:[%s1325_s1 + $0x10] sm:$0xff] (!%p278_p12)   ;;  %v328_v11 = vld [vmem:[%s1326_s2 + $0x8] sm:$0xff] (!%p278_p12)  ;;  %vm557_vm1 = vcmask (!%p278_p12), 523264  }
  0x1f   : > { %s286_s29 = scalar_lea.vmem (!%p278_p12), [#allocation2], %s1162_s23  ;;  %960 = vset.pattern.permute.xlu1 (!%p278_p12), %v1055_v6  ;;  %337 = vperm.xlu0 (!%p278_p12), %959, %v327_v7   ;;  %v330_v12 = vld [vmem:[%s1326_s2 + $0x18] sm:$0xff] (!%p278_p12)  ;;  %v331_v13 = vld [vmem:[%s1326_s2 + $0x20] sm:$0xff] (!%p278_p12)  ;;  %v332_v14 = vld [vmem:[%s1326_s2 + $0x28] sm:$0xff] (!%p278_p12)  ;;  %s314_s22 = scalar_lea.vmem (!%p278_p12), [#allocation3], %s1162_s23 }
  0x20   : > { %v1166_v3 = vld [vmem:[%s286_s29] sm:$0xff] (!%p278_p12)  ;;  %v1168_v4 = vld [vmem:[%s286_s29 + $0x8] sm:$0xff] (!%p278_p12)  ;;  %347 = vperm.xlu1 (!%p278_p12), %960, %v329_v8   ;;  %s759_s29 = sshll.u32 (!%p278_p12), %s314_s22, 4  ;;  %s856_s8 = sshll.u32 (!%p278_p12), %s826_s28, 7  ;;  %s1272_s29 = int_to_ptr.vmem [resolvable:$true] %s759_s29 }
  0x21   : > { %v318_v5 = vpack.c.bf16 (!%p278_p12), %v1168_v4, %v1166_v3  ;;  %v964_v15 = vld [vmem:[%s1325_s1 + $0x18] sm:$0xff] (!%p278_p12)   ;;  %v333_v16 = vld [vmem:[%s1326_s2 + $0x30] sm:$0xff] (!%p278_p12)  ;;  %v489_v18 = vld [vmem:[%s1328_s4] sm:$0xff] (!%p278_p12)  ;;  %s1278_s13 = scalar_lea.hbm (!%p278_p12), %s1331_s7, %s856_s8  ;;  %s1282_s28 = scalar_lea.sflag (!%p278_p12), [#allocation4], %s284_s20 }
  0x22   : > { %v334_v17 = vld [vmem:[%s1326_s2 + $0x38] sm:$0xff] (!%p278_p12)  ;;  %v490_v19 = vld [vmem:[%s1328_s4 + $0x8] sm:$0xff] (!%p278_p12)  ;;  %v491_v20 = vld [vmem:[%s1328_s4 + $0x10] sm:$0xff] (!%p278_p12)  ;;  %s991_s14 = scalar_lea.vmem (!%p278_p12), %s1272_s29, 256  ;;  %s1056_s15 = smov (!%p278_p12), [#allocation3]  }
  0x23   : > { %878 = vmatprep.subr.bf16.mxu0 (!%p278_p12), %v318_v5  ;;  %342 = vperm.xlu0 (!%p278_p12), %959, %v328_v11   ;;  %v492_v21 = vld [vmem:[%s1328_s4 + $0x18] sm:$0xff] (!%p278_p12)  ;;  %v493_v22 = vld [vmem:[%s1328_s4 + $0x20] sm:$0xff] (!%p278_p12)  ;;  %v494_v23 = vld [vmem:[%s1328_s4 + $0x28] sm:$0xff] (!%p278_p12)  ;;  %p992_p13 = scmp.ne.s32.totalorder (!%p278_p12), %s1272_s29, %s991_s14  ;;  %s995_s16 = sshll.u32 (!%p278_p12), %s1056_s15, 4  ;;  %s996_s16 = int_to_ptr.vmem [resolvable:$false] %s995_s16 }
  0x24   : > { %879 = vmatpush3.bf16.msra.mxu0 (!%p278_p12), %v318_v5  ;;  %352 = vperm.xlu1 (!%p278_p12), %960, %v330_v12   ;;  %v495_v24 = vld [vmem:[%s1328_s4 + $0x30] sm:$0xff] (!%p278_p12)  ;;  %v496_v25 = vld [vmem:[%s1328_s4 + $0x38] sm:$0xff] (!%p278_p12)  ;;  %v647_v26 = vld [vmem:[%s1330_s6] sm:$0xff] (!%p278_p12)  ;;  %s997_s17 = scalar_lea.vmem (!%p278_p12), %s996_s16, 512  ;;  %p998_p2 = scmp.lt.s32.totalorder (!%p278_p12), %s1272_s29, %s996_s16 }
  0x25   : > { %v648_v27 = vld [vmem:[%s1330_s6 + $0x8] sm:$0xff]  ;;  %v649_v28 = vld [vmem:[%s1330_s6 + $0x10] sm:$0xff]  ;;  %v650_v29 = vld [vmem:[%s1330_s6 + $0x18] sm:$0xff]  ;;  %p993_p0 = pnand %p992_p13, %p1138_p6  ;;  %p999_p3 = scmp.lt.s32.totalorder %s997_s17, %s991_s14 }
  0x26   : > { %v965_v30 = vld [vmem:[%s1327_s3] sm:$0xff]   ;;  %v966_v63 = vld [vmem:[%s1327_s3 + $0x8] sm:$0xff]   ;;  %v967_v0 = vld [vmem:[%s1327_s3 + $0x10] sm:$0xff]  }
  0x27   : > { %881 = vmatmul.mubr.msk.bf16.vlgmr.msra.gmra.mrb[0].mxu0 %vm395_vm0, %v962_v9  ;;  %357 = vperm.xlu0 %959, %v331_v13   ;;  %v968_v1 = vld [vmem:[%s1327_s3 + $0x18] sm:$0xff]   ;;  %v969_v2 = vld [vmem:[%s1329_s5] sm:$0xff]   ;;  %p994_p1 = pneg %p993_p0  ;;  %p1000_p4 = por %p999_p3, %p998_p2 }
  0x28   : > { %884 = vmatprep.mubr.msk.bf16.mxu0 %vm395_vm0, %v963_v10  ;;  %362 = vperm.xlu1 %960, %v332_v14  }
  0x29   : > { %896 = vmatprep.mubr.msk.bf16.mxu1 %vm557_vm1, %v965_v30  ;;  %p1001_p5 = pnand %p1000_p4, %p994_p1 }
  0x2b   : > { %367 = vperm.xlu0 %959, %v333_v16  }
  0x2c   : > { %372 = vperm.xlu1 %960, %v334_v17  }
  0x2f   : > { %885 = vmatmul.mubr.msk.bf16.gmra.mrb[4].mxu0 %vm395_vm0, %v964_v15  ;;  %499 = vperm.xlu0 %959, %v489_v18  }
  0x30   : > { %504 = vperm.xlu1 %960, %v490_v19   ;;  %912 = vmatprep.mubr.msk.bf16.mxu0 %vm557_vm1, %v969_v2 }
  0x33   : > { %509 = vperm.xlu0 %959, %v491_v20  }
  0x34   : > { %514 = vperm.xlu1 %960, %v492_v21  }
  0x37   : > { %519 = vperm.xlu0 %959, %v493_v22  }
  0x38   : > { %524 = vperm.xlu1 %960, %v494_v23  }
  0x3b   : > { %529 = vperm.xlu0 %959, %v495_v24  }
  0x3c   : > { %534 = vperm.xlu1 %960, %v496_v25  }
  0x3f   : > { %653 = vperm.xlu0 %959, %v647_v26  }
  0x40   : > { %658 = vperm.xlu1 %960, %v648_v27  }
  0x43   : > { %663 = vperm.xlu0 %959, %v649_v28  }
  0x44   : > { %668 = vperm.xlu1 %960, %v650_v29  }
  0x9e   : > { %v338_v31 = vpop.permute.xlu0 %337 }
  0x9f   : > { %v348_v32 = vpop.permute.xlu1 %347 }
  0xa2   : > { %v343_v33 = vpop.permute.xlu0 %342 }
  0xa3   : > { %v353_v34 = vpop.permute.xlu1 %352 }
  0xa6   : > { %v358_v38 = vpop.permute.xlu0 %357 }
  0xa7   : > { %v363_v42 = vpop.permute.xlu1 %362 }
  0xaa   : > { %v368_v48 = vpop.permute.xlu0 %367 }
  0xab   : > { %v373_v50 = vpop.permute.xlu1 %372 }
  0xae   : > { %v500_v5 = vpop.permute.xlu0 %499 }
  0xaf   : > { %v505_v6 = vpop.permute.xlu1 %504 }
  0xb2   : > { %v510_v7 = vpop.permute.xlu0 %509 }
  0xb3   : > { %v515_v8 = vpop.permute.xlu1 %514 }
  0xb6   : > { %v520_v12 = vpop.permute.xlu0 %519 }
  0xb7   : > { %v525_v16 = vpop.permute.xlu1 %524 }
  0xba   : > { %v530_v22 = vpop.permute.xlu0 %529 }
  0xbb   : > { %v535_v24 = vpop.permute.xlu1 %534 }
  0xfa   : > { %v882_v35 = vpop.f32.mrb[0].mxu0 }
  0xfb   : > { %v442_v36 = vpop.f32.mrb[1].mxu0  ;;  %v451_v39 = vadd.f32 %v882_v35, %v348_v32 }
  0xfc   : > { %v883_v37 = vpop.f32.mrb[2].mxu0  ;;  %v443_v43 = vadd.f32 %v442_v36, %v338_v31 }
  0xfd   : > { %v454_v40 = vadd.f32 %v883_v37, %v353_v34  ;;  %v445_v41 = vpop.f32.mrb[3].mxu0  ;;  %v970_v37 = vld [vmem:[%s1329_s5 + $0x8] sm:$0xff]  }
  0xfe   : > { %v446_v44 = vadd.f32 %v445_v41, %v343_v33 }
  0xff   : > { %v474_v45 = vpack.c.bf16 %v454_v40, %v451_v39  ;;  %v654_v39 = vpop.permute.xlu0 %653 }
 0x100   : > { %v473_v46 = vpack.c.bf16 %v446_v44, %v443_v43  ;;  %v659_v43 = vpop.permute.xlu1 %658 }
 0x102   : > { %971 = vtanh.bf16 %v473_v46  ;;  %v886_v47 = vpop.f32.mrb[4].mxu0 }
 0x103   : > { %v458_v49 = vpop.f32.mrb[5].mxu0  ;;  %973 = vtanh.bf16 %v474_v45  ;;  %v467_v52 = vadd.f32 %v886_v47, %v368_v48 }
 0x104   : > { %v887_v51 = vpop.f32.mrb[6].mxu0  ;;  %v459_v55 = vadd.f32 %v458_v49, %v358_v38  ;;  %v664_v49 = vpop.permute.xlu0 %663 }
 0x105   : > { %v470_v53 = vadd.f32 %v887_v51, %v373_v50  ;;  %v461_v54 = vpop.f32.mrb[7].mxu0 }
 0x106   : > { %v462_v56 = vadd.f32 %v461_v54, %v363_v42 }
 0x107   : > { %v476_v57 = vpack.c.bf16 %v470_v53, %v467_v52  ;;  %v669_v53 = vpop.permute.xlu1 %668 }
 0x108   : > { %v475_v58 = vpack.c.bf16 %v462_v56, %v459_v55 }
 0x10a   : > { %975 = vtanh.bf16 %v475_v58 }
 0x10b   : > { %977 = vtanh.bf16 %v476_v57 }
 0x10d   : > { %v972_v59 = vpop.eup %971 }
 0x10e   : > { %888 = vmatprep.subr.bf16.mxu1 %v972_v59  ;;  %v974_v60 = vpop.eup %973 }
 0x10f   : > { %889 = vmatpush3.bf16.msra.mxu1 %v972_v59 }
 0x110   : > { %890 = vmatprep.subr.bf16.mxu1 %v974_v60 }
 0x113   : > { %891 = vmatpush3.bf16.msra.mxu1 %v974_v60 }
 0x115   : > { %v976_v61 = vpop.eup %975 }
 0x116   : > { %892 = vmatprep.subr.bf16.mxu1 %v976_v61  ;;  %v978_v62 = vpop.eup %977 }
 0x117   : > { %893 = vmatpush3.bf16.msra.mxu1 %v976_v61 }
 0x118   : > { %894 = vmatprep.subr.bf16.mxu1 %v978_v62 }
 0x11b   : > { %895 = vmatpush3.bf16.msra.mxu1 %v978_v62 }
 0x11e   : > { %897 = vmatmul.mubr.msk.bf16.vlgmr.msra.gmra.mrb[0].mxu1 %vm557_vm1, %v966_v63 }
 0x11f   : > { %900 = vmatprep.mubr.msk.bf16.mxu1 %vm557_vm1, %v967_v0 }
 0x126   : > { %901 = vmatmul.mubr.msk.bf16.gmra.mrb[4].mxu1 %vm557_vm1, %v968_v1 }
 0x1f1   : > { %v898_v9 = vpop.f32.mrb[0].mxu1 }
 0x1f2   : > { %v604_v10 = vpop.f32.mrb[1].mxu1  ;;  %v613_v13 = vadd.f32 %v898_v9, %v510_v7 }
 0x1f3   : > { %v899_v11 = vpop.f32.mrb[2].mxu1  ;;  %v605_v17 = vadd.f32 %v604_v10, %v500_v5 }
 0x1f4   : > { %v616_v14 = vadd.f32 %v899_v11, %v515_v8  ;;  %v607_v15 = vpop.f32.mrb[3].mxu1 }
 0x1f5   : > { %v608_v18 = vadd.f32 %v607_v15, %v505_v6 }
 0x1f6   : > { %v636_v19 = vpack.c.bf16 %v616_v14, %v613_v13 }
 0x1f7   : > { %v635_v20 = vpack.c.bf16 %v608_v18, %v605_v17 }
 0x1f9   : > { %979 = vtanh.bf16 %v635_v20  ;;  %v902_v21 = vpop.f32.mrb[4].mxu1 }
 0x1fa   : > { %v620_v23 = vpop.f32.mrb[5].mxu1  ;;  %981 = vtanh.bf16 %v636_v19  ;;  %v629_v26 = vadd.f32 %v902_v21, %v530_v22 }
 0x1fb   : > { %v903_v25 = vpop.f32.mrb[6].mxu1  ;;  %v621_v29 = vadd.f32 %v620_v23, %v520_v12 }
 0x1fc   : > { %v632_v27 = vadd.f32 %v903_v25, %v535_v24  ;;  %v623_v28 = vpop.f32.mrb[7].mxu1 }
 0x1fd   : > { %v624_v30 = vadd.f32 %v623_v28, %v525_v16 }
 0x1fe   : > { %v638_v31 = vpack.c.bf16 %v632_v27, %v629_v26 }
 0x1ff   : > { %v637_v32 = vpack.c.bf16 %v624_v30, %v621_v29 }
 0x201   : > { %983 = vtanh.bf16 %v637_v32 }
 0x202   : > { %985 = vtanh.bf16 %v638_v31 }
 0x204   : > { %v980_v33 = vpop.eup %979 }
 0x205   : > { %904 = vmatprep.subr.bf16.mxu0 %v980_v33  ;;  %v982_v34 = vpop.eup %981 }
 0x206   : > { %905 = vmatpush3.bf16.msra.mxu0 %v980_v33 }
 0x207   : > { %906 = vmatprep.subr.bf16.mxu0 %v982_v34 }
 0x20a   : > { %907 = vmatpush3.bf16.msra.mxu0 %v982_v34 }
 0x20c   : > { %v984_v35 = vpop.eup %983 }
 0x20d   : > { %908 = vmatprep.subr.bf16.mxu0 %v984_v35  ;;  %v986_v36 = vpop.eup %985 }
 0x20e   : > { %909 = vmatpush3.bf16.msra.mxu0 %v984_v35 }
 0x20f   : > { %910 = vmatprep.subr.bf16.mxu0 %v986_v36 }
 0x212   : > { %911 = vmatpush3.bf16.msra.mxu0 %v986_v36 }
 0x215   : > { %913 = vmatmul.mubr.msk.bf16.vlgmr.msra.gmra.mrb[8].mxu0 %vm557_vm1, %v970_v37 }
 0x2e8   : > { %v914_v38 = vpop.f32.mrb[8].mxu0 }
 0x2e9   : > { %v721_v40 = vpop.f32.mrb[9].mxu0  ;;  %v730_v50 = vadd.f32 %v914_v38, %v664_v49 }
 0x2ea   : > { %v722_v41 = vadd.f32 %v721_v40, %v654_v39  ;;  %v915_v42 = vpop.f32.mrb[10].mxu0 }
 0x2eb   : > { %v724_v44 = vpop.f32.mrb[11].mxu0  ;;  %v733_v55 = vadd.f32 %v915_v42, %v669_v53 }
 0x2ec   : > { %v736_v45 = vmul.f32 1.442695, %v722_v41  ;;  %v725_v46 = vadd.f32 %v724_v44, %v659_v43 }
 0x2ee   : > { %987 = vpow2.f32 %v736_v45  ;;  %v738_v47 = vmul.f32 1.442695, %v725_v46 }
 0x2f0   : > { %989 = vpow2.f32 %v738_v47 }
 0x2f8   : > { %v988_v48 = vpop.eup %987 }
 0x2f9   : > { %v740_v51 = vmul.f32 %v988_v48, %v1166_v3 }
 0x2fa   : > { %v990_v52 = vpop.eup %989 }
 0x2fb   : > { %v742_v54 = vadd.f32 %v740_v51, %v730_v50  ;;  %v741_v56 = vmul.f32 %v990_v52, %v1168_v4 }
 0x2fd   : > { %744 = vst [vmem:[%s314_s22] sm:$0xff] %v742_v54  ;;  %v743_v3 = vadd.f32 %v741_v56, %v733_v55 }
 0x2ff   : > { %745 = vst [vmem:[%s314_s22 + $0x8] sm:$0xff] %v743_v3 }
 0x300   : > { %1004 = shalt.err (!%p1001_p5)
}
 0x301   : > { %s1005_s20 = scalar_lea.hbm %s1278_s13, 256  ;;  %s1009_s21 = scalar_lea.hbm %s1331_s7, 512 }
 0x302   : > { %p1006_p7 = scmp.ne.s32.totalorder %s1278_s13, %s1005_s20  ;;  %p1010_p12 = scmp.lt.u32.totalorder %s1278_s13, %s1331_s7 }
 0x303   : > { %p1011_p13 = scmp.lt.u32.totalorder %s1009_s21, %s1005_s20  ;;  %p1013_p1 = scmp.lt.u32.totalorder %s1005_s20, %s1278_s13 }
 0x304   : > { %p1007_p10 = pnand %p1006_p7, %p1138_p6 }
 0x305   : > { %p1012_p0 = por %p1011_p13, %p1010_p12 }
 0x306   : > { %p1008_p11 = pneg %p1007_p10 }
 0x307   : > { %p1014_p2 = por %p1013_p1, %p1012_p0 }
 0x309   : > { %p1015_p3 = pnand %p1014_p2, %p1008_p11 }
 0x30b   : > { %1018 = shalt.err (!%p1015_p3)
}
 0x30c   : > { %s1057_s23 = smov 128   ;;  %s1058_s9 = smov 256  }
 0x30d   : > { %s1059_s14 = smov 8  }
 0x30e   : > { %916 = dma.vmem_to_hbm [thread:$0]  (%p1138_p6), %s1272_s29, 256, %s1278_s13, %s1282_s28, %s1057_s23, %s1058_s9, %s1059_s14  }
 0x30f PF: > { %s774_s15 = sand.u32 1, %s1041_s24   ;;  %p919_p4 = pnand %p829_p9, %p1142_p8 }
 0x310   : > { %s775_s16 = scalar_lea.sflag [#allocation4], %s774_s15 }
 0x311   : > { %1036 = dma.done.wait (!%p919_p4), %s775_s16, 256  }
 0x312   : > { %1038 = vsyncadd (!%p919_p4), %s775_s16, 4294967040  ;;  %p17_p5 = scmp.ge.s32.totalorder %s1123_s30, 4   ;;  %s1334_s24 = smov %s1045_s25 }
 0x313   : > { %s1335_s25 = smov %s1049_s26  ;;  %s1336_s26 = smov %s1136_s10 }
 0x314   : > { %s1337_s27 = smov %s1123_s30  ;;  %19 = sbr.rel (!%p17_p5) target bundleno = 3 (0x3), region = 126 }
 0x31b   :  { %780 = vsyncpa [#allocation4], 1 }
 0x31c   :  { %782 = vsyncpa [#allocation4 + $0x1], 1 }

</bundles_post_ra>
